<compile_context>
chip_gen: v7x
topology: tpu7x:2x2x1
jax: 0.10.0
libtpu: 0.0.40
codegen_flags: <defaults>
</compile_context>

<pallas_src>
import jax
import jax.numpy as jnp
from jax import lax
from jax.experimental import pallas as pl
from jax.experimental.pallas import tpu as pltpu


# dot_general dimension numbers for "contract the last dim of both operands"
# (i.e. A @ B.T) -- the same transposed-RHS pattern flash attention uses.
_TRANS_B_DIMS = (((1,), (1,)), ((), ()))


def mlp_kernel(x_ref, w1_ref, b1_ref, w2_ref, b2_ref, w3_ref, b3_ref, o_ref):
    x = x_ref[...]                                    # (TB, D_in), natural layout
    # fc1 + ReLU : (10, D_in) x (TB, D_in)^T -> (10, TB)   (batch lands on lanes)
    h1 = lax.dot_general(w1_ref[...], x, _TRANS_B_DIMS,
                         preferred_element_type=jnp.float32) + b1_ref[...]
    h1 = jnp.maximum(h1, 0.0)
    # fc2 + ReLU : (10, 10) @ (10, TB) -> (10, TB)
    h2 = jnp.dot(w2_ref[...], h1, preferred_element_type=jnp.float32) + b2_ref[...]
    h2 = jnp.maximum(h2, 0.0)
    # fc3 : out_dim == 1 -> VPU multiply + sublane reduce (skip the MXU for N=1)
    y = jnp.sum(h2 * w3_ref[...], axis=0, keepdims=True) + b3_ref[...]   # (1, TB)
    o_ref[...] = y.astype(o_ref.dtype)


def mynet_forward(x, params, *, tb_max=16384):
    """x: (B, D_in) float32. Returns (B, 1) float32 (same as PyTorch MyNet.forward).

    params layout (see init_params):
      w1: (10, D_in)  b1: (10, 1)
      w2: (10, 10)    b2: (10, 1)
      w3: (10, 1)     b3: (1, 1)
    """
    B, D_in = x.shape
    w1, b1 = params["w1"], params["b1"]
    w2, b2 = params["w2"], params["b2"]
    w3, b3 = params["w3"], params["b3"]

    # --- batch tiling -------------------------------------------------------
    # Enough grid steps that each x tile is <= tb_max rows; keep >= 2 steps for
    # non-trivial batches so v7x's two TensorCores both get work.
    steps = pl.cdiv(B, tb_max)
    if B > 256:
        steps = max(steps, 2)
    TB = 128 * pl.cdiv(pl.cdiv(B, steps), 128)        # rows per step (mult. of 128)
    grid = pl.cdiv(B, TB)
    Bp = grid * TB                                    # padded batch (output only)

    x_in = x
    if B < TB:
        # Single block larger than the array: pad the (tiny) input once.
        x_in = jnp.pad(x, ((0, TB - B), (0, 0)))
    # For B >= TB the final (possibly partial) input block is handled by Pallas:
    # out-of-bounds rows read as garbage, flow through *independent* batch
    # columns, and are sliced off below.  No padded copy of x is materialized.

    # Weights / biases: constant index_map -> DMA'd once, VMEM-resident.
    resident = lambda a: pl.BlockSpec(a.shape, lambda i: (0, 0))

    out = pl.pallas_call(
        mlp_kernel,
        out_shape=jax.ShapeDtypeStruct((1, Bp), jnp.float32),
        grid=(grid,),
        in_specs=[
            pl.BlockSpec((TB, D_in), lambda i: (i, 0)),   # x streamed, natural layout
            resident(w1), resident(b1),
            resident(w2), resident(b2),
            resident(w3), resident(b3),
        ],
        out_specs=pl.BlockSpec((1, TB), lambda i: (0, i)),   # lane-dense output tile
        compiler_params=pltpu.CompilerParams(
            dimension_semantics=("parallel",),               # 2-TC split on v7x
            vmem_limit_bytes=32 * 1024 * 1024,               # headroom on v5e, v7x default
        ),
    )(x_in, w1, b1, w2, b2, w3, b3)

    # (1, Bp) -> (B, 1); output is 32x fewer bytes than x, so this is free-ish.
    return jnp.reshape(out[0, :B], (B, 1))


def init_params(key, input_size, hidden=10, out_dim=1):
    """PyTorch nn.Linear default init: U[-1/sqrt(fan_in), 1/sqrt(fan_in)].

    fc1/fc2 weights kept in PyTorch-native (out, in) layout; fc3 weight stored
    as a (hidden, 1) column (== PyTorch (1, hidden) transposed) for the VPU
    reduce; biases stored as column vectors for lane-broadcast in-kernel.
    """
    def linear(k, fan_in, fan_out):
        kw, kb = jax.random.split(k)
        bound = fan_in ** -0.5
        w = jax.random.uniform(kw, (fan_out, fan_in), jnp.float32, -bound, bound)
        b = jax.random.uniform(kb, (fan_out, 1), jnp.float32, -bound, bound)
        return w, b

    k1, k2, k3 = jax.random.split(key, 3)
    w1, b1 = linear(k1, input_size, hidden)     # (10, D_in), (10, 1)
    w2, b2 = linear(k2, hidden, hidden)         # (10, 10),   (10, 1)
    w3_pt, b3 = linear(k3, hidden, out_dim)     # (1, 10),    (1, 1)
    return {"w1": w1, "b1": b1, "w2": w2, "b2": b2,
            "w3": jnp.transpose(w3_pt), "b3": b3}   # w3 as (10, 1) column


def mynet_reference(x, params):
    """Plain-JAX reference (matches PyTorch MyNet.forward)."""
    h1 = jnp.maximum(x @ params["w1"].T + params["b1"].T, 0.0)
    h2 = jnp.maximum(h1 @ params["w2"].T + params["b2"].T, 0.0)
    return h2 @ params["w3"] + params["b3"].T


if __name__ == "__main__":
    key = jax.random.PRNGKey(0)
    kx1, kx2, kp = jax.random.split(key, 3)

    input_size = 32  # MyNet(input_shape=32)
    params = init_params(kp, input_size)

    # Small batch: exercises the B < TB pad path (B=8 -> single 128-row tile).
    x_small = jax.random.normal(kx1, (8, input_size), dtype=jnp.float32)
    y_small = jax.block_until_ready(mynet_forward(x_small, params))
    assert y_small.shape == (8, 1), y_small.shape
    assert jnp.allclose(y_small, mynet_reference(x_small, params), atol=1e-5, rtol=1e-5), \
        "small-batch mismatch vs reference"

    # Larger batch: exercises the 2-step grid with a partial final input block
    # (B=300 -> TB=256, grid=(2,), second block reads 44 garbage rows that are
    # sliced off).
    x_big = jax.random.normal(kx2, (300, input_size), dtype=jnp.float32)
    y_big = jax.block_until_ready(mynet_forward(x_big, params))
    assert y_big.shape == (300, 1), y_big.shape
    assert jnp.allclose(y_big, mynet_reference(x_big, params), atol=1e-5, rtol=1e-5), \
        "tiled-batch mismatch vs reference"

    print("KERNEL_OK")
</pallas_src>

<mosaic_0001>
module attributes {stable_mosaic.version = 11 : i64} {
  func.func @mlp_kernel(%arg0: i32, %arg1: memref<128x32xf32, #tpu.memory_space<vmem>>, %arg2: memref<10x32xf32, #tpu.memory_space<vmem>>, %arg3: memref<10x1xf32, #tpu.memory_space<vmem>>, %arg4: memref<10x10xf32, #tpu.memory_space<vmem>>, %arg5: memref<10x1xf32, #tpu.memory_space<vmem>>, %arg6: memref<10x1xf32, #tpu.memory_space<vmem>>, %arg7: memref<1x1xf32, #tpu.memory_space<vmem>>, %arg8: memref<1x128xf32, #tpu.memory_space<vmem>>) attributes {dimension_semantics = [#tpu.dimension_semantics<parallel>], iteration_bounds = array<i64: 1>, scalar_prefetch = 0 : i64, scratch_operands = 0 : i64, tpu.core_type = #tpu.core_type<tc>, window_params = [{transform_indices = @transform_0, window_bounds = array<i64: 128, 32>}, {pipeline_mode = #tpu.pipeline_mode<synchronous>, transform_indices = @transform_1, window_bounds = array<i64: 10, 32>}, {pipeline_mode = #tpu.pipeline_mode<synchronous>, transform_indices = @transform_2, window_bounds = array<i64: 10, 1>}, {pipeline_mode = #tpu.pipeline_mode<synchronous>, transform_indices = @transform_3, window_bounds = array<i64: 10, 10>}, {pipeline_mode = #tpu.pipeline_mode<synchronous>, transform_indices = @transform_4, window_bounds = array<i64: 10, 1>}, {pipeline_mode = #tpu.pipeline_mode<synchronous>, transform_indices = @transform_5, window_bounds = array<i64: 10, 1>}, {pipeline_mode = #tpu.pipeline_mode<synchronous>, transform_indices = @transform_6, window_bounds = array<i64: 1, 1>}, {transform_indices = @transform_7, window_bounds = array<i64: 1, 128>}]} {
    %c0 = arith.constant 0 : index
    %c0_0 = arith.constant 0 : index
    %0 = vector.load %arg1[%c0, %c0_0] : memref<128x32xf32, #tpu.memory_space<vmem>>, vector<128x32xf32>
    %c0_1 = arith.constant 0 : index
    %c0_2 = arith.constant 0 : index
    %1 = vector.load %arg2[%c0_1, %c0_2] : memref<10x32xf32, #tpu.memory_space<vmem>>, vector<10x32xf32>
    %cst = arith.constant dense<0.000000e+00> : vector<10x128xf32>
    %2 = tpu.matmul %1, %0, %cst {dimension_numbers = #tpu.dot_dimension_numbers<[1], [1], [0], [0], [0, 0, 1, 0], [], []>} : vector<10x32xf32>, vector<128x32xf32>, vector<10x128xf32> -> vector<10x128xf32>
    %c0_3 = arith.constant 0 : index
    %c0_4 = arith.constant 0 : index
    %3 = vector.load %arg3[%c0_3, %c0_4] : memref<10x1xf32, #tpu.memory_space<vmem>>, vector<10x1xf32>
    %4 = vector.broadcast %3 : vector<10x1xf32> to vector<10x128xf32>
    %5 = arith.addf %2, %4 : vector<10x128xf32>
    %cst_5 = arith.constant 0.000000e+00 : f32
    %6 = vector.broadcast %cst_5 : f32 to vector<10x128xf32>
    %7 = arith.maximumf %5, %6 : vector<10x128xf32>
    %c0_6 = arith.constant 0 : index
    %c0_7 = arith.constant 0 : index
    %8 = vector.load %arg4[%c0_6, %c0_7] : memref<10x10xf32, #tpu.memory_space<vmem>>, vector<10x10xf32>
    %cst_8 = arith.constant dense<0.000000e+00> : vector<10x128xf32>
    %9 = tpu.matmul %8, %7, %cst_8 {dimension_numbers = #tpu.dot_dimension_numbers<[1], [0], [0], [1], [0, 0, 1, 1], [], []>} : vector<10x10xf32>, vector<10x128xf32>, vector<10x128xf32> -> vector<10x128xf32>
    %c0_9 = arith.constant 0 : index
    %c0_10 = arith.constant 0 : index
    %10 = vector.load %arg5[%c0_9, %c0_10] : memref<10x1xf32, #tpu.memory_space<vmem>>, vector<10x1xf32>
    %11 = vector.broadcast %10 : vector<10x1xf32> to vector<10x128xf32>
    %12 = arith.addf %9, %11 : vector<10x128xf32>
    %cst_11 = arith.constant 0.000000e+00 : f32
    %13 = vector.broadcast %cst_11 : f32 to vector<10x128xf32>
    %14 = arith.maximumf %12, %13 : vector<10x128xf32>
    %c0_12 = arith.constant 0 : index
    %c0_13 = arith.constant 0 : index
    %15 = vector.load %arg6[%c0_12, %c0_13] : memref<10x1xf32, #tpu.memory_space<vmem>>, vector<10x1xf32>
    %16 = vector.broadcast %15 : vector<10x1xf32> to vector<10x128xf32>
    %17 = arith.mulf %14, %16 : vector<10x128xf32>
    %cst_14 = arith.constant dense<0.000000e+00> : vector<128xf32>
    %18 = vector.multi_reduction <add>, %17, %cst_14 [0] : vector<10x128xf32> to vector<128xf32>
    %19 = vector.shape_cast %18 : vector<128xf32> to vector<1x128xf32>
    %c0_15 = arith.constant 0 : index
    %c0_16 = arith.constant 0 : index
    %20 = vector.load %arg7[%c0_15, %c0_16] : memref<1x1xf32, #tpu.memory_space<vmem>>, vector<1x1xf32>
    %21 = vector.broadcast %20 : vector<1x1xf32> to vector<1x128xf32>
    %22 = arith.addf %19, %21 : vector<1x128xf32>
    %c0_17 = arith.constant 0 : index
    %c0_18 = arith.constant 0 : index
    %23 = vector.load %arg8[%c0_17, %c0_18] : memref<1x128xf32, #tpu.memory_space<vmem>>, vector<1x128xf32>
    tpu.vector_store %arg8[%c0_17, %c0_18], %22 {strides = array<i32>} : memref<1x128xf32, #tpu.memory_space<vmem>>, vector<1x128xf32>,
    return
  }
  func.func @transform_0(%arg0: i32) -> (i32, i32) {
    %c0_i32 = arith.constant 0 : i32
    %c0_i32_0 = arith.constant 0 : i32
    return %arg0, %c0_i32 : i32, i32
  }
  func.func @transform_1(%arg0: i32) -> (i32, i32) {
    %c0_i32 = arith.constant 0 : i32
    %c0_i32_0 = arith.constant 0 : i32
    %c0_i32_1 = arith.constant 0 : i32
    return %c0_i32, %c0_i32_0 : i32, i32
  }
  func.func @transform_2(%arg0: i32) -> (i32, i32) {
    %c0_i32 = arith.constant 0 : i32
    %c0_i32_0 = arith.constant 0 : i32
    %c0_i32_1 = arith.constant 0 : i32
    return %c0_i32, %c0_i32_0 : i32, i32
  }
  func.func @transform_3(%arg0: i32) -> (i32, i32) {
    %c0_i32 = arith.constant 0 : i32
    %c0_i32_0 = arith.constant 0 : i32
    %c0_i32_1 = arith.constant 0 : i32
    return %c0_i32, %c0_i32_0 : i32, i32
  }
  func.func @transform_4(%arg0: i32) -> (i32, i32) {
    %c0_i32 = arith.constant 0 : i32
    %c0_i32_0 = arith.constant 0 : i32
    %c0_i32_1 = arith.constant 0 : i32
    return %c0_i32, %c0_i32_0 : i32, i32
  }
  func.func @transform_5(%arg0: i32) -> (i32, i32) {
    %c0_i32 = arith.constant 0 : i32
    %c0_i32_0 = arith.constant 0 : i32
    %c0_i32_1 = arith.constant 0 : i32
    return %c0_i32, %c0_i32_0 : i32, i32
  }
  func.func @transform_6(%arg0: i32) -> (i32, i32) {
    %c0_i32 = arith.constant 0 : i32
    %c0_i32_0 = arith.constant 0 : i32
    %c0_i32_1 = arith.constant 0 : i32
    return %c0_i32, %c0_i32_0 : i32, i32
  }
  func.func @transform_7(%arg0: i32) -> (i32, i32) {
    %c0_i32 = arith.constant 0 : i32
    %c0_i32_0 = arith.constant 0 : i32
    return %c0_i32, %arg0 : i32, i32
  }
}

</mosaic_0001>

<bundles_post_ra>
// kernel: tpu_custom_call.1
= control target key start
LH: loop header
LB: loop body
LE: loop exit
PB: predicated region body
PF: predicated region fallthrough
CT: control target
= control target key end

     0   :  { %s689_s0 = inlined_call_operand.vmem [shape: f32[128,32], index: 0, kind: input, shape index: {}]   ;;  %s690_s1 = inlined_call_operand.vmem [shape: f32[10,32], index: 1, kind: input, shape index: {}]   ;;  %s691_s2 = inlined_call_operand.vmem [shape: f32[10,1], index: 2, kind: input, shape index: {}]   ;;  %s692_s3 = inlined_call_operand.vmem [shape: f32[10,10], index: 3, kind: input, shape index: {}]   ;;  %s693_s4 = inlined_call_operand.vmem [shape: f32[10,1], index: 4, kind: input, shape index: {}]   ;;  %s694_s5 = inlined_call_operand.vmem [shape: f32[10,1], index: 5, kind: input, shape index: {}]   ;;  %s695_s6 = inlined_call_operand.<no memory space> [shape: f32[1,1], index: 6, kind: input, shape index: {}]   ;;  %s696_s7 = inlined_call_operand.hbm [shape: f32[1,128], index: 7, kind: output, shape index: {}]  }
   0x1   :  { %v12_v0 = vstv %s695_s6 }
   0x2   :  { %13 = vst [vmem:[#allocation2] sm:$0x1] %v12_v0 }
   0x3   :  { %v29_v1 = vld [vmem:[%s689_s0] sm:$0xff]  ;;  %v30_v2 = vld [vmem:[%s689_s0 + $0x8] sm:$0xff]  ;;  %vm59_vm0 = vcmask 261120   ;;  %v31_v3 = vld [vmem:[%s689_s0 + $0x10] sm:$0xff]  ;;  %v509_v7 = vmov 0  }
   0x4   :  { %v426_v4 = vpack.c.bf16 %v30_v2, %v29_v1  ;;  %vm566_vm1 = vmpackc.low %vm59_vm0, %vm59_vm0  ;;  %v32_v6 = vld [vmem:[%s689_s0 + $0x18] sm:$0xff]  ;;  %483 = vset.pattern.permute.xlu0 %v509_v7  ;;  %484 = vset.pattern.permute.xlu1 %v509_v7  ;;  %v45_v9 = vld [vmem:[%s690_s1] sm:$0xff] }
   0x5   :  { %v432_v8 = vpack.c.bf16 %v32_v6, %v31_v3  ;;  %v33_v10 = vld [vmem:[%s689_s0 + $0x20] sm:$0xff]  ;;  %v34_v11 = vld [vmem:[%s689_s0 + $0x28] sm:$0xff]  ;;  %416 = vmatprep.mubr.msk.f32.mxu0 %vm59_vm0, %v45_v9 }
   0x6   :  { %428 = vmatprep.subr.msk.bf16.mxu0 %vm566_vm1, %v426_v4  ;;  %v47_v12 = vld [vmem:[%s691_s2] sm:$0xff] }
   0x7   :  { %431 = vmatpush3.bf16.xpose.msk.msra.mxu0 %vm566_vm1, %v426_v4  ;;  %51 = vperm.xlu0 %483, %v47_v12  }
   0x8   :  { %434 = vmatprep.subr.msk.bf16.mxu0 %vm566_vm1, %v432_v8 }
   0x9   :  { %14 = vsyncpa [#allocation4], 0  ;;  %v48_v13 = vld [vmem:[%s691_s2 + $0x8] sm:$0x3]  ;;  %v438_v14 = vpack.c.bf16 %v34_v11, %v33_v10  ;;  %v35_v16 = vld [vmem:[%s689_s0 + $0x30] sm:$0xff]  ;;  %vm205_vm2 = vcmask 80896   ;;  %v321_v60 = vlaneseq }
   0xa   :  { %v294_v15 = vld [vmem:[%s694_s5 + $0x8] sm:$0x3]  ;;  %v36_v17 = vld [vmem:[%s689_s0 + $0x38] sm:$0xff]  ;;  %v315_v18 = vld [vmem:[#allocation2] sm:$0x1]  ;;  %vm212_vm3 = vcmask 1041408  }
   0xb   :  { %56 = vperm.xlu0 %483, %v48_v13   ;;  %v444_v19 = vpack.c.bf16 %v36_v17, %v35_v16  ;;  %v37_v20 = vld [vmem:[%s689_s0 + $0x40] sm:$0xff]  ;;  %v38_v21 = vld [vmem:[%s689_s0 + $0x48] sm:$0xff]  ;;  %v39_v23 = vld [vmem:[%s689_s0 + $0x50] sm:$0xff]  ;;  %vm510_vm4 = vmmov 1   ;;  %v322_v63 = vshrl.u32 %v321_v60, 7 }
   0xc   :  { %v450_v22 = vpack.c.bf16 %v38_v21, %v37_v20  ;;  %v40_v24 = vld [vmem:[%s689_s0 + $0x58] sm:$0xff]  ;;  %v41_v26 = vld [vmem:[%s689_s0 + $0x60] sm:$0xff]  ;;  %v42_v27 = vld [vmem:[%s689_s0 + $0x68] sm:$0xff] }
   0xd   :  { %v456_v25 = vpack.c.bf16 %v40_v24, %v39_v23  ;;  %v462_v28 = vpack.c.bf16 %v42_v27, %v41_v26  ;;  %v43_v29 = vld [vmem:[%s689_s0 + $0x70] sm:$0xff]  ;;  %v44_v30 = vld [vmem:[%s689_s0 + $0x78] sm:$0xff]  ;;  %v46_v32 = vld [vmem:[%s690_s1 + $0x8] sm:$0x3]  ;;  %v323_v2 = vsub.s32 0, %v322_v63 }
   0xe   :  { %v468_v31 = vpack.c.bf16 %v44_v30, %v43_v29  ;;  %v191_v33 = vld [vmem:[%s692_s3] sm:$0xff]  ;;  %v194_v34 = vld [vmem:[%s693_s4 + $0x8] sm:$0x3]  ;;  %vm475_vm5 = vmpackc.low %vm212_vm3, %vm510_vm4 }
   0xf   :  { %437 = vmatpush3.bf16.xpose.msk.msra.mxu0 %vm566_vm1, %v432_v8  ;;  %302 = vperm.xlu0 %483, %v294_v15   ;;  %v193_v35 = vld [vmem:[%s693_s4] sm:$0xff]  ;;  %v192_v46 = vld [vmem:[%s692_s3 + $0x8] sm:$0x3]  ;;  %s511_s3 = smov [#allocation3]  }
  0x10   :  { %440 = vmatprep.subr.msk.bf16.mxu0 %vm566_vm1, %v438_v14  ;;  %423 = vmatprep.mubr.msk.f32.mxu1 %vm205_vm2, %v191_v33  ;;  %v293_v36 = vld [vmem:[%s694_s5] sm:$0xff]  ;;  %s333_s5 = sshll.u32 %s511_s3, 4  ;;  %s334_s5 = int_to_ptr.vmem [resolvable:$true] %s333_s5 }
  0x11   :  { %202 = vperm.xlu1 %484, %v194_v34   ;;  %s485_s2 = scalar_lea.vmem %s334_s5, 16  ;;  %s489_s26 = scalar_lea.vmem %s334_s5, 32 }
  0x12   :  { %p486_p0 = scmp.ne.s32.totalorder %s334_s5, %s485_s2  ;;  %p490_p1 = scmp.lt.s32.totalorder %s334_s5, %s334_s5 }
  0x13   :  { %318 = vperm.xlu0 %483, %v315_v18   ;;  %p491_p2 = scmp.lt.s32.totalorder %s489_s26, %s485_s2 }
  0x15   :  { %197 = vperm.xlu1 %484, %v193_v35   ;;  %p492_p3 = por %p491_p2, %p490_p1 }
  0x17   :  { %443 = vmatpush3.bf16.xpose.msk.msra.mxu0 %vm566_vm1, %v438_v14  ;;  %p493_p4 = pnand %p492_p3, %p486_p0 }
  0x18   :  { %446 = vmatprep.subr.msk.bf16.mxu0 %vm566_vm1, %v444_v19 }
  0x19   :  { %297 = vperm.xlu1 %484, %v293_v36  }
  0x1f   :  { %449 = vmatpush3.bf16.xpose.msk.msra.mxu0 %vm566_vm1, %v444_v19 }
  0x20   :  { %452 = vmatprep.subr.msk.bf16.mxu0 %vm566_vm1, %v450_v22 }
  0x27   :  { %455 = vmatpush3.bf16.xpose.msk.msra.mxu0 %vm566_vm1, %v450_v22 }
  0x28   :  { %458 = vmatprep.subr.msk.bf16.mxu0 %vm566_vm1, %v456_v25 }
  0x2f   :  { %461 = vmatpush3.bf16.xpose.msk.msra.mxu0 %vm566_vm1, %v456_v25 }
  0x30   :  { %464 = vmatprep.subr.msk.bf16.mxu0 %vm566_vm1, %v462_v28 }
  0x37   :  { %467 = vmatpush3.bf16.xpose.msk.msra.mxu0 %vm566_vm1, %v462_v28 }
  0x38   :  { %470 = vmatprep.subr.msk.bf16.mxu0 %vm566_vm1, %v468_v31 }
  0x3f   :  { %473 = vmatpush3.bf16.xpose.msk.msra.mxu0 %vm566_vm1, %v468_v31 }
  0x46   :  { %417 = vmatmul.mubr.msk.f32.vlgmr.msra.gmra.mrb[0].mxu0 %vm59_vm0, %v46_v32 }
  0x86   :  { %v52_v37 = vpop.permute.xlu0 %51 }
  0x8a   :  { %v57_v38 = vpop.permute.xlu0 %56 }
  0x8e   :  { %v303_v54 = vpop.permute.xlu0 %302 }
  0x90   :  { %v203_v47 = vpop.permute.xlu1 %202 }
  0x92   :  { %v319_v4 = vpop.permute.xlu0 %318 }
  0x93   :  { %v324_v6 = vrot.slane %v319_v4, %v323_v2 }
  0x94   :  { %v198_v48 = vpop.permute.xlu1 %197 }
  0x98   :  { %v298_v56 = vpop.permute.xlu1 %297 }
 0x119   :  { %v418_v39 = vpop.f32.mrb[0].mxu0 }
 0x11a   :  { %v186_v40 = vadd.f32 %v418_v39, %v57_v38  ;;  %v180_v41 = vpop.f32.mrb[1].mxu0 }
 0x11b   :  { %v181_v42 = vadd.f32 %v180_v41, %v52_v37 }
 0x11c   :  { %v190_v43 = vmax.f32 %v186_v40, 0.0 }
 0x11d   :  { %v189_v44 = vmax.f32 %v181_v42, 0.0 }
 0x11f   :  { %v474_v45 = vpack.c.bf16 %v190_v43, %v189_v44 }
 0x121   :  { %476 = vmatprep.subr.msk.bf16.mxu1 %vm475_vm5, %v474_v45 }
 0x122   :  { %479 = vmatpush3.bf16.msk.msra.mxu1 %vm475_vm5, %v474_v45 }
 0x125   :  { %424 = vmatmul.mubr.msk.f32.vlgmr.msra.gmra.mrb[0].mxu1 %vm205_vm2, %v192_v46 }
 0x1f8   :  { %v425_v49 = vpop.f32.mrb[0].mxu1 }
 0x1f9   :  { %v288_v50 = vadd.f32 %v425_v49, %v203_v47  ;;  %v282_v51 = vpop.f32.mrb[1].mxu1 }
 0x1fa   :  { %v283_v52 = vadd.f32 %v282_v51, %v198_v48 }
 0x1fb   :  { %v292_v53 = vmax.f32 %v288_v50, 0.0 }
 0x1fc   :  { %v291_v55 = vmax.f32 %v283_v52, 0.0 }
 0x1fd   :  { %v306_v57 = vmul.f32 %v303_v54, %v292_v53 }
 0x1fe   :  { %v305_v58 = vmul.f32 %v298_v56, %v291_v55 }
 0x1ff   :  { %v307_v59 = vsel %vm212_vm3, %v306_v57, 0.0 }
 0x200   :  { %v308_v61 = vadd.f32 %v307_v59, %v305_v58 }
 0x202   :  { %v309_v62 = vrot.slane %v308_v61, 4 }
 0x204   :  { %v310_v0 = vadd.f32 %v309_v62, %v308_v61 }
 0x206   :  { %v311_v1 = vrot.slane %v310_v0, 2 }
 0x208   :  { %v312_v3 = vadd.f32 %v311_v1, %v310_v0 }
 0x20a   :  { %v313_v5 = vrot.slane %v312_v3, 1 }
 0x20c   :  { %v314_v7 = vadd.f32 %v313_v5, %v312_v3 }
 0x20e   :  { %v325_v8 = vadd.f32 %v324_v6, %v314_v7 }
 0x210   :  { %326 = vst [vmem:[#allocation3] sm:$0x1] %v325_v8 }
 0x211   :  { %496 = shalt.err (!%p493_p4)
}
 0x212   :  { %s497_s29 = scalar_lea.hbm %s696_s7, 16 }
 0x213   :  { %p498_p5 = scmp.ne.s32.totalorder %s696_s7, %s497_s29  ;;  %p501_p6 = scmp.lt.u32.totalorder %s497_s29, %s696_s7 }
 0x215   :  { %p503_p7 = pnand %p501_p6, %p498_p5 }
 0x217   :  { %506 = shalt.err (!%p503_p7)
}
 0x218   :  { %336 = dma.vmem_to_hbm [thread:$0]  %s334_s5, 16, %s696_s7, [#allocation4]  }
 0x219   :  { %507 = dma.done.wait [#allocation4], 16  }
 0x21a   :  { %508 = vsyncadd [#allocation4], 4294967280 }
 0x21b   :  { %340 = vsyncpa [#allocation4], 1 }

</bundles_post_ra>
